<compile_context>
chip_gen: v7x
topology: tpu7x:2x2x1
jax: 0.10.0
libtpu: 0.0.40
codegen_flags: <defaults>
</compile_context>

<pallas_src>
import functools

import jax
import jax.numpy as jnp
from jax.experimental import pallas as pl
from jax.experimental.pallas import tpu as pltpu

INV_SQRT2 = 0.7071067811865476


def _onto_xor(a, b):
    # OntologicalOperations.xor: a + b - 2*a*b
    return a + b - 2.0 * a * b


def _gelu_exact(x):
    # torch.nn.GELU() default (erf-based, exact).
    # TODO(synk): for small-H / VALU-bound configs a tanh-approx GELU (EUP slot)
    # would be faster, but it changes numerics vs the PyTorch module.
    return 0.5 * x * (1.0 + jax.lax.erf(x * INV_SQRT2))


def _shift_last(x):
    # OntologicalOperations.shift == torch.roll(x, shifts=1, dims=-1)
    h = x.shape[-1]
    if h % 128 == 0:
        # Lane rotation on the XLU -- co-issues for free while the MXU binds.
        return pltpu.roll(x, shift=1, axis=x.ndim - 1)
    # H not a multiple of 128: exact concat fallback.  (Padding H to 128 would
    # wrap padding columns into position 0 and break roll semantics.)
    return jnp.concatenate([x[:, h - 1:], x[:, : h - 1]], axis=1)


# ---------------------------------------------------------------------------
# Kernel 1: encoder layers.  grid = (num_token_tiles, num_layers); hidden
# state is carried in the resident output block across the layer axis.
# ---------------------------------------------------------------------------
def encoder_kernel(h0_ref, w1_ref, b1_ref, w2_ref, b2_ref, hid_ref):
    layer = pl.program_id(1)

    @pl.when(layer == 0)
    def _init():
        # h0 is the wrapper-side pre-xored (embeddings XOR positional) tile.
        hid_ref[...] = h0_ref[...]

    h = hid_ref[...]                  # f32 carry (never round-trips HBM per layer)
    w1 = w1_ref[0]                    # (H, H) bf16, streamed per layer
    b1 = b1_ref[0]                    # (1, H) f32
    w2 = w2_ref[0]
    b2 = b2_ref[0]

    z = jnp.dot(h.astype(w1.dtype), w1, preferred_element_type=jnp.float32) + b1
    g = _gelu_exact(z)
    layer_out = (
        jnp.dot(g.astype(w2.dtype), w2, preferred_element_type=jnp.float32) + b2
    )

    # hidden = xor(shift(hidden), flip(layer_out))
    hid_ref[...] = _onto_xor(_shift_last(h), 1.0 - layer_out)


# ---------------------------------------------------------------------------
# Kernel 2: classifier head, tiled over (token, vocab).
# ---------------------------------------------------------------------------
def cls_head_kernel(h_ref, wc_ref, bc_ref, out_ref):
    acc = (
        jnp.dot(h_ref[...].astype(wc_ref.dtype), wc_ref[...],
                preferred_element_type=jnp.float32)
        + bc_ref[...]
    )
    out_ref[...] = acc.astype(out_ref.dtype)


# ---------------------------------------------------------------------------
# Kernel 3: pooler (Linear + Tanh) on the CLS-token hidden state (tiny).
# ---------------------------------------------------------------------------
def pooler_kernel(h0_ref, wp_ref, bp_ref, pool_ref):
    hb = h0_ref[...].astype(wp_ref.dtype)
    pool_ref[...] = jnp.tanh(
        jnp.dot(hb, wp_ref[...], preferred_element_type=jnp.float32) + bp_ref[...]
    )


# ---------------------------------------------------------------------------
# Hardware / tile-size helpers
# ---------------------------------------------------------------------------
def _hw_config():
    """Generation-aware VMEM budget / tile targets."""
    kind = ""
    try:
        kind = jax.devices()[0].device_kind.lower()
    except Exception:  # pragma: no cover - defensive
        pass
    if "v7" in kind or "tpu7" in kind:
        # v7x: 64 MiB physical VMEM per TC -> leave headroom; 2 TCs/chip.
        return dict(vmem_limit=48 * 1024 * 1024, target_rows=512, num_cores=2)
    if "v6" in kind:
        # v6e: weight-DMA break-even ~650 rows; 128 MiB VMEM available.
        return dict(vmem_limit=100 * 1024 * 1024, target_rows=1024, num_cores=1)
    if "v5" in kind:
        return dict(vmem_limit=100 * 1024 * 1024, target_rows=1024, num_cores=1)
    # Unknown generation: conservative defaults.
    return dict(vmem_limit=64 * 1024 * 1024, target_rows=512, num_cores=1)


def _pick_block_b(batch, seq, hidden, *, block_b, target_rows, vmem_limit,
                  num_cores):
    """Pick sequences-per-tile tb (tm = tb*seq rows)."""
    if block_b is not None:
        tb = int(block_b)
        while batch % tb != 0:
            tb -= 1
    else:
        # VMEM budget: double-buffered bf16 w1+w2 (8*H^2 bytes) plus roughly
        # {init input x2buf, hidden out x2buf, ~6 live f32 temporaries} per row.
        weight_bytes = 8 * hidden * hidden
        per_row = (2 + 2 + 6) * hidden * 4
        avail = max(int(vmem_limit * 0.85) - weight_bytes, per_row * 8)
        row_cap = max(8, avail // per_row)
        rows = min(target_rows, row_cap)
        tb = max(1, min(batch, rows // max(seq, 1)))
        if num_cores > 1 and batch >= num_cores:
            # keep >= num_cores steps on the "parallel" token axis (megacore).
            tb = max(1, min(tb, batch // num_cores))
        while batch % tb != 0:
            tb -= 1
    tm = tb * seq
    # (8, 128) rule: second-to-last block dim must be a multiple of 8 or full.
    if tm % 8 != 0 and tm != batch * seq:
        tb, tm = batch, batch * seq
    return tb, tm


def _pick_vocab_tiling(vocab, block_v):
    """Return (tv, padded_vocab); tv is always a multiple of 128."""
    if block_v is not None:
        tv = int(block_v)
        if tv % 128 != 0:
            tv = max(128, (tv // 128) * 128)
    else:
        tv = 512 if vocab >= 512 else 128
    vp = ((vocab + tv - 1) // tv) * tv
    return tv, vp


def prepare_params(params):
    """One-time (outside jit) bf16 cast of all matmul weights."""
    out = dict(params)
    for k in ("w1", "w2", "wc", "wp"):
        out[k] = params[k].astype(jnp.bfloat16)
    return out


# ---------------------------------------------------------------------------
# Wrapper
# ---------------------------------------------------------------------------
def ontological_transformer_forward(input_ids, params, *, block_b=None,
                                    block_v=None, logits_dtype=jnp.float32):
    """Returns (last_hidden_state, pooler_output, logits)."""
    emb_table = params["emb"]              # (vocab, H)
    pos_table = params["pos"]              # (max_pos, H)
    w1s, b1s = params["w1"], params["b1"]  # (L,H,H) bf16, (L,1,H) f32
    w2s, b2s = params["w2"], params["b2"]
    wp, bp = params["wp"], params["bp"]    # (H,H) bf16, (1,H) f32
    wc, bc = params["wc"], params["bc"]    # (H,V) bf16, (1,V) f32

    B, S = input_ids.shape
    V, H = emb_table.shape
    L = w1s.shape[0]
    N = B * S

    # no-op if prepare_params() was used (preferred: cast once outside jit)
    w1b = w1s.astype(jnp.bfloat16)
    w2b = w2s.astype(jnp.bfloat16)
    wcb = wc.astype(jnp.bfloat16)
    wpb = wp.astype(jnp.bfloat16)

    hw = _hw_config()
    tb, tm = _pick_block_b(B, S, H, block_b=block_b,
                           target_rows=hw["target_rows"],
                           vmem_limit=hw["vmem_limit"],
                           num_cores=hw["num_cores"])
    nb = N // tm
    tv, Vp = _pick_vocab_tiling(V, block_v)
    nv = Vp // tv

    # Glue (XLA): embedding gather (data-dependent) fused with the positional
    # XOR -> a single pre-xored (N, H) init tensor for the encoder kernel.
    emb = emb_table[input_ids].astype(jnp.float32)                 # (B,S,H)
    pos = pos_table[:S].astype(jnp.float32)[None]                  # (1,S,H)
    h0 = _onto_xor(emb, pos).reshape(N, H)

    enc_cparams = pltpu.CompilerParams(
        dimension_semantics=("parallel", "arbitrary"),
        vmem_limit_bytes=hw["vmem_limit"],
    )

    # TODO(synk): for H >= ~2048 the (1,H,H) weight blocks should be split into
    # column chunks (inner pipeline) to fit VMEM; not needed at these sizes.
    # TODO(synk): the h0 init input is read only at layer 0; single-buffering it
    # (pipeline_mode=pl.Buffered(1)) would free ~2*tm*H*4 bytes on v7x.
    hid_flat = pl.pallas_call(
        encoder_kernel,
        out_shape=jax.ShapeDtypeStruct((N, H), jnp.float32),
        grid_spec=pltpu.PrefetchScalarGridSpec(
            num_scalar_prefetch=0,
            grid=(nb, L),
            in_specs=[
                pl.BlockSpec((tm, H), lambda i, l: (i, 0)),        # pre-xored init
                pl.BlockSpec((1, H, H), lambda i, l: (l, 0, 0)),   # w1 (streamed)
                pl.BlockSpec((1, 1, H), lambda i, l: (l, 0, 0)),   # b1
                pl.BlockSpec((1, H, H), lambda i, l: (l, 0, 0)),   # w2 (streamed)
                pl.BlockSpec((1, 1, H), lambda i, l: (l, 0, 0)),   # b2
            ],
            out_specs=pl.BlockSpec((tm, H), lambda i, l: (i, 0)),  # carried hidden
        ),
        compiler_params=enc_cparams,
    )(h0, w1b, b1s, w2b, b2s)

    # Classifier head over a lane-dense, 128-multiple padded vocab.
    if Vp != V:
        wc_p = jnp.pad(wcb, ((0, 0), (0, Vp - V)))
        bc_p = jnp.pad(bc, ((0, 0), (0, Vp - V)))
    else:
        wc_p, bc_p = wcb, bc

    logits_flat = pl.pallas_call(
        cls_head_kernel,
        out_shape=jax.ShapeDtypeStruct((N, Vp), logits_dtype),
        grid_spec=pltpu.PrefetchScalarGridSpec(
            num_scalar_prefetch=0,
            grid=(nb, nv),
            in_specs=[
                pl.BlockSpec((tm, H), lambda i, j: (i, 0)),
                pl.BlockSpec((H, tv), lambda i, j: (0, j)),
                pl.BlockSpec((1, tv), lambda i, j: (0, j)),
            ],
            out_specs=pl.BlockSpec((tm, tv), lambda i, j: (i, j)),
        ),
        compiler_params=pltpu.CompilerParams(
            dimension_semantics=("parallel", "parallel"),
            vmem_limit_bytes=hw["vmem_limit"],
        ),
    )(hid_flat, wc_p, bc_p)

    last_hidden_state = hid_flat.reshape(B, S, H)
    logits = logits_flat[:, :V].reshape(B, S, V)

    # Glue: pick CLS token of every sequence, then tiny pooler kernel.
    h_cls = last_hidden_state[:, 0, :]
    vmem = pl.BlockSpec(memory_space=pltpu.MemorySpace.VMEM)
    pooler_output = pl.pallas_call(
        pooler_kernel,
        out_shape=jax.ShapeDtypeStruct((B, H), jnp.float32),
        in_specs=[vmem, vmem, vmem],
        out_specs=vmem,
    )(h_cls, wpb, bp)

    # TODO(synk): CrossEntropyLoss branch (labels is not None) omitted; forward
    # with labels=None is implemented exactly.
    return last_hidden_state, pooler_output, logits


# ---------------------------------------------------------------------------
# Pure-JAX reference (mirrors the PyTorch module) for validation.
# `matmul_dtype=bf16` mimics the kernel's bf16-operand / f32-accumulate dots.
# ---------------------------------------------------------------------------
def reference_forward(input_ids, params, matmul_dtype=jnp.float32):
    emb_table, pos_table = params["emb"], params["pos"]
    B, S = input_ids.shape
    V, H = emb_table.shape

    def mm(x, w):
        return jnp.dot(
            x.astype(matmul_dtype), w.astype(matmul_dtype),
            preferred_element_type=jnp.float32,
        )

    emb = emb_table[input_ids]
    pos = jnp.broadcast_to(pos_table[jnp.arange(S)][None], (B, S, H))
    h = _onto_xor(emb, pos)
    for l in range(params["w1"].shape[0]):
        z = mm(h, params["w1"][l]) + params["b1"][l]
        layer_out = mm(_gelu_exact(z), params["w2"][l]) + params["b2"][l]
        h = _onto_xor(jnp.roll(h, 1, axis=-1), 1.0 - layer_out)
    pooled = jnp.tanh(mm(h[:, 0], params["wp"]) + params["bp"][0])
    logits = mm(h, params["wc"]) + params["bc"][0]
    return h, pooled, logits


def init_params(key, vocab_size, hidden_size, max_pos, num_layers):
    ks = jax.random.split(key, 8)
    scale = 0.02
    return {
        "emb": scale * jax.random.normal(ks[0], (vocab_size, hidden_size), jnp.float32),
        "pos": scale * jax.random.normal(ks[1], (max_pos, hidden_size), jnp.float32),
        "w1": scale * jax.random.normal(ks[2], (num_layers, hidden_size, hidden_size), jnp.float32),
        "b1": jnp.zeros((num_layers, 1, hidden_size), jnp.float32),
        "w2": scale * jax.random.normal(ks[3], (num_layers, hidden_size, hidden_size), jnp.float32),
        "b2": jnp.zeros((num_layers, 1, hidden_size), jnp.float32),
        "wp": scale * jax.random.normal(ks[4], (hidden_size, hidden_size), jnp.float32),
        "bp": jnp.zeros((1, hidden_size), jnp.float32),
        "wc": scale * jax.random.normal(ks[5], (hidden_size, vocab_size), jnp.float32),
        "bc": jnp.zeros((1, vocab_size), jnp.float32),
    }


if __name__ == "__main__":
    VOCAB, HIDDEN, MAX_POS, LAYERS = 64, 32, 16, 2
    B, S = 2, 8

    key = jax.random.PRNGKey(0)
    k_param, k_ids = jax.random.split(key)
    params = init_params(k_param, VOCAB, HIDDEN, MAX_POS, LAYERS)
    input_ids = jax.random.randint(k_ids, (B, S), 0, VOCAB, dtype=jnp.int32)

    # One-time bf16 weight cast OUTSIDE the jitted forward.
    params_run = prepare_params(params)

    # block_b=1 -> a 2-step "parallel" token grid even at this toy size,
    # exercising the (token, layer) pipeline.
    fwd = jax.jit(
        functools.partial(
            ontological_transformer_forward, params=params_run, block_b=1
        )
    )
    hid, pooled, logits = fwd(input_ids)
    jax.block_until_ready((hid, pooled, logits))

    assert hid.shape == (B, S, HIDDEN)
    assert pooled.shape == (B, HIDDEN)
    assert logits.shape == (B, S, VOCAB)

    # Tight check against a reference that uses the same bf16-operand /
    # f32-accumulate matmuls as the kernel.
    hid_m, pooled_m, logits_m = reference_forward(
        input_ids, params, matmul_dtype=jnp.bfloat16
    )
    assert jnp.allclose(hid, hid_m, atol=1e-3, rtol=1e-3)
    assert jnp.allclose(pooled, pooled_m, atol=1e-3, rtol=1e-3)
    assert jnp.allclose(logits, logits_m, atol=1e-3, rtol=1e-3)

    # Loose sanity check against the full-f32 PyTorch-equivalent reference
    # (bf16 matmul operands bound the deviation).
    hid_f, pooled_f, logits_f = reference_forward(input_ids, params)
    assert jnp.allclose(hid, hid_f, atol=1e-2, rtol=1e-2)
    assert jnp.allclose(pooled, pooled_f, atol=1e-2, rtol=1e-2)
    assert jnp.allclose(logits, logits_f, atol=1e-2, rtol=1e-2)

    print("KERNEL_OK")
</pallas_src>

<mosaic_0001>
module attributes {stable_mosaic.version = 11 : i64} {
  func.func @pooler_kernel(%arg0: memref<2x32xf32, #tpu.memory_space<vmem>>, %arg1: memref<32x32xbf16, #tpu.memory_space<vmem>>, %arg2: memref<1x32xf32, #tpu.memory_space<vmem>>, %arg3: memref<2x32xf32, #tpu.memory_space<vmem>>) attributes {dimension_semantics = [], scalar_prefetch = 0 : i64, scratch_operands = 0 : i64, tpu.core_type = #tpu.core_type<tc>} {
    %c0 = arith.constant 0 : index
    %c0_0 = arith.constant 0 : index
    %0 = vector.load %arg0[%c0, %c0_0] : memref<2x32xf32, #tpu.memory_space<vmem>>, vector<2x32xf32>
    %1 = arith.truncf %0 : vector<2x32xf32> to vector<2x32xbf16>
    %c0_1 = arith.constant 0 : index
    %c0_2 = arith.constant 0 : index
    %2 = vector.load %arg1[%c0_1, %c0_2] : memref<32x32xbf16, #tpu.memory_space<vmem>>, vector<32x32xbf16>
    %cst = arith.constant dense<0.000000e+00> : vector<2x32xf32>
    %3 = tpu.matmul %1, %2, %cst {dimension_numbers = #tpu.dot_dimension_numbers<[1], [0], [0], [1], [0, 0, 1, 1], [], []>} : vector<2x32xbf16>, vector<32x32xbf16>, vector<2x32xf32> -> vector<2x32xf32>
    %c0_3 = arith.constant 0 : index
    %c0_4 = arith.constant 0 : index
    %4 = vector.load %arg2[%c0_3, %c0_4] : memref<1x32xf32, #tpu.memory_space<vmem>>, vector<1x32xf32>
    %5 = vector.broadcast %4 : vector<1x32xf32> to vector<2x32xf32>
    %6 = arith.addf %3, %5 : vector<2x32xf32>
    %7 = math.tanh %6 : vector<2x32xf32>
    %c0_5 = arith.constant 0 : index
    %c0_6 = arith.constant 0 : index
    %8 = vector.load %arg3[%c0_5, %c0_6] : memref<2x32xf32, #tpu.memory_space<vmem>>, vector<2x32xf32>
    tpu.vector_store %arg3[%c0_5, %c0_6], %7 {strides = array<i32>} : memref<2x32xf32, #tpu.memory_space<vmem>>, vector<2x32xf32>,
    return
  }
}

module attributes {stable_mosaic.version = 11 : i64} {
  func.func @cls_head_kernel(%arg0: i32, %arg1: i32, %arg2: memref<8x32xf32, #tpu.memory_space<vmem>>, %arg3: memref<32x128xbf16, #tpu.memory_space<vmem>>, %arg4: memref<1x128xf32, #tpu.memory_space<vmem>>, %arg5: memref<8x128xf32, #tpu.memory_space<vmem>>) attributes {dimension_semantics = [#tpu.dimension_semantics<parallel>, #tpu.dimension_semantics<parallel>], iteration_bounds = array<i64: 2, 1>, scalar_prefetch = 0 : i64, scratch_operands = 0 : i64, tpu.core_type = #tpu.core_type<tc>, window_params = [{transform_indices = @transform_0, window_bounds = array<i64: 8, 32>}, {transform_indices = @transform_1, window_bounds = array<i64: 32, 128>}, {transform_indices = @transform_2, window_bounds = array<i64: 1, 128>}, {transform_indices = @transform_3, window_bounds = array<i64: 8, 128>}]} {
    %c0 = arith.constant 0 : index
    %c0_0 = arith.constant 0 : index
    %0 = vector.load %arg2[%c0, %c0_0] : memref<8x32xf32, #tpu.memory_space<vmem>>, vector<8x32xf32>
    %1 = arith.truncf %0 : vector<8x32xf32> to vector<8x32xbf16>
    %c0_1 = arith.constant 0 : index
    %c0_2 = arith.constant 0 : index
    %2 = vector.load %arg3[%c0_1, %c0_2] : memref<32x128xbf16, #tpu.memory_space<vmem>>, vector<32x128xbf16>
    %cst = arith.constant dense<0.000000e+00> : vector<8x128xf32>
    %3 = tpu.matmul %1, %2, %cst {dimension_numbers = #tpu.dot_dimension_numbers<[1], [0], [0], [1], [0, 0, 1, 1], [], []>} : vector<8x32xbf16>, vector<32x128xbf16>, vector<8x128xf32> -> vector<8x128xf32>
    %c0_3 = arith.constant 0 : index
    %c0_4 = arith.constant 0 : index
    %4 = vector.load %arg4[%c0_3, %c0_4] : memref<1x128xf32, #tpu.memory_space<vmem>>, vector<1x128xf32>
    %5 = vector.broadcast %4 : vector<1x128xf32> to vector<8x128xf32>
    %6 = arith.addf %3, %5 : vector<8x128xf32>
    %c0_5 = arith.constant 0 : index
    %c0_6 = arith.constant 0 : index
    %7 = vector.load %arg5[%c0_5, %c0_6] : memref<8x128xf32, #tpu.memory_space<vmem>>, vector<8x128xf32>
    tpu.vector_store %arg5[%c0_5, %c0_6], %6 {strides = array<i32>} : memref<8x128xf32, #tpu.memory_space<vmem>>, vector<8x128xf32>,
    return
  }
  func.func @transform_0(%arg0: i32, %arg1: i32) -> (i32, i32) {
    %c0_i32 = arith.constant 0 : i32
    %c0_i32_0 = arith.constant 0 : i32
    return %arg0, %c0_i32 : i32, i32
  }
  func.func @transform_1(%arg0: i32, %arg1: i32) -> (i32, i32) {
    %c0_i32 = arith.constant 0 : i32
    %c0_i32_0 = arith.constant 0 : i32
    return %c0_i32, %arg1 : i32, i32
  }
  func.func @transform_2(%arg0: i32, %arg1: i32) -> (i32, i32) {
    %c0_i32 = arith.constant 0 : i32
    %c0_i32_0 = arith.constant 0 : i32
    return %c0_i32, %arg1 : i32, i32
  }
  func.func @transform_3(%arg0: i32, %arg1: i32) -> (i32, i32) {
    %c0_i32 = arith.constant 0 : i32
    return %arg0, %arg1 : i32, i32
  }
}

module attributes {stable_mosaic.version = 11 : i64} {
  func.func @encoder_kernel(%arg0: i32, %arg1: i32, %arg2: memref<8x32xf32, #tpu.memory_space<vmem>>, %arg3: memref<1x32x32xbf16, #tpu.memory_space<vmem>>, %arg4: memref<1x1x32xf32, #tpu.memory_space<vmem>>, %arg5: memref<1x32x32xbf16, #tpu.memory_space<vmem>>, %arg6: memref<1x1x32xf32, #tpu.memory_space<vmem>>, %arg7: memref<8x32xf32, #tpu.memory_space<vmem>>) attributes {dimension_semantics = [#tpu.dimension_semantics<parallel>, #tpu.dimension_semantics<arbitrary>], iteration_bounds = array<i64: 2, 2>, scalar_prefetch = 0 : i64, scratch_operands = 0 : i64, tpu.core_type = #tpu.core_type<tc>, window_params = [{transform_indices = @transform_0, window_bounds = array<i64: 8, 32>}, {transform_indices = @transform_1, window_bounds = array<i64: 1, 32, 32>}, {transform_indices = @transform_2, window_bounds = array<i64: 1, 1, 32>}, {transform_indices = @transform_3, window_bounds = array<i64: 1, 32, 32>}, {transform_indices = @transform_4, window_bounds = array<i64: 1, 1, 32>}, {transform_indices = @transform_5, window_bounds = array<i64: 8, 32>}]} {
    %c0_i32 = arith.constant 0 : i32
    %0 = arith.cmpi eq, %arg1, %c0_i32 : i32
    %1 = arith.extui %0 : i1 to i32
    %c0_i32_0 = arith.constant 0 : i32
    %2 = arith.cmpi ne, %1, %c0_i32_0 : i32
    scf.if %2 {
      %c0_22 = arith.constant 0 : index
      %c0_23 = arith.constant 0 : index
      %39 = vector.load %arg2[%c0_22, %c0_23] : memref<8x32xf32, #tpu.memory_space<vmem>>, vector<8x32xf32>
      %c0_24 = arith.constant 0 : index
      %c0_25 = arith.constant 0 : index
      %40 = vector.load %arg7[%c0_24, %c0_25] : memref<8x32xf32, #tpu.memory_space<vmem>>, vector<8x32xf32>
      tpu.vector_store %arg7[%c0_24, %c0_25], %39 {strides = array<i32>} : memref<8x32xf32, #tpu.memory_space<vmem>>, vector<8x32xf32>,
    } else {
    }
    %c0 = arith.constant 0 : index
    %c0_1 = arith.constant 0 : index
    %3 = vector.load %arg7[%c0, %c0_1] : memref<8x32xf32, #tpu.memory_space<vmem>>, vector<8x32xf32>
    %c0_2 = arith.constant 0 : index
    %c0_3 = arith.constant 0 : index
    %c0_4 = arith.constant 0 : index
    %4 = vector.load %arg3[%c0_2, %c0_3, %c0_4] : memref<1x32x32xbf16, #tpu.memory_space<vmem>>, vector<1x32x32xbf16>
    %5 = vector.shape_cast %4 : vector<1x32x32xbf16> to vector<32x32xbf16>
    %c0_5 = arith.constant 0 : index
    %c0_6 = arith.constant 0 : index
    %c0_7 = arith.constant 0 : index
    %6 = vector.load %arg4[%c0_5, %c0_6, %c0_7] : memref<1x1x32xf32, #tpu.memory_space<vmem>>, vector<1x1x32xf32>
    %7 = vector.shape_cast %6 : vector<1x1x32xf32> to vector<1x32xf32>
    %c0_8 = arith.constant 0 : index
    %c0_9 = arith.constant 0 : index
    %c0_10 = arith.constant 0 : index
    %8 = vector.load %arg5[%c0_8, %c0_9, %c0_10] : memref<1x32x32xbf16, #tpu.memory_space<vmem>>, vector<1x32x32xbf16>
    %9 = vector.shape_cast %8 : vector<1x32x32xbf16> to vector<32x32xbf16>
    %c0_11 = arith.constant 0 : index
    %c0_12 = arith.constant 0 : index
    %c0_13 = arith.constant 0 : index
    %10 = vector.load %arg6[%c0_11, %c0_12, %c0_13] : memref<1x1x32xf32, #tpu.memory_space<vmem>>, vector<1x1x32xf32>
    %11 = vector.shape_cast %10 : vector<1x1x32xf32> to vector<1x32xf32>
    %12 = arith.truncf %3 : vector<8x32xf32> to vector<8x32xbf16>
    %cst = arith.constant dense<0.000000e+00> : vector<8x32xf32>
    %13 = tpu.matmul %12, %5, %cst {dimension_numbers = #tpu.dot_dimension_numbers<[1], [0], [0], [1], [0, 0, 1, 1], [], []>} : vector<8x32xbf16>, vector<32x32xbf16>, vector<8x32xf32> -> vector<8x32xf32>
    %14 = vector.broadcast %7 : vector<1x32xf32> to vector<8x32xf32>
    %15 = arith.addf %13, %14 : vector<8x32xf32>
    %cst_14 = arith.constant 5.000000e-01 : f32
    %16 = vector.broadcast %cst_14 : f32 to vector<8x32xf32>
    %17 = arith.mulf %16, %15 : vector<8x32xf32>
    %cst_15 = arith.constant 0.707106769 : f32
    %18 = vector.broadcast %cst_15 : f32 to vector<8x32xf32>
    %19 = arith.mulf %15, %18 : vector<8x32xf32>
    %20 = math.erf %19 : vector<8x32xf32>
    %cst_16 = arith.constant 1.000000e+00 : f32
    %21 = vector.broadcast %cst_16 : f32 to vector<8x32xf32>
    %22 = arith.addf %21, %20 : vector<8x32xf32>
    %23 = arith.mulf %17, %22 : vector<8x32xf32>
    %24 = arith.truncf %23 : vector<8x32xf32> to vector<8x32xbf16>
    %cst_17 = arith.constant dense<0.000000e+00> : vector<8x32xf32>
    %25 = tpu.matmul %24, %9, %cst_17 {dimension_numbers = #tpu.dot_dimension_numbers<[1], [0], [0], [1], [0, 0, 1, 1], [], []>} : vector<8x32xbf16>, vector<32x32xbf16>, vector<8x32xf32> -> vector<8x32xf32>
    %26 = vector.broadcast %11 : vector<1x32xf32> to vector<8x32xf32>
    %27 = arith.addf %25, %26 : vector<8x32xf32>
    %28 = vector.extract_strided_slice %3 {offsets = [0, 31], sizes = [8, 1], strides = [1, 1]} : vector<8x32xf32> to vector<8x1xf32>
    %29 = vector.extract_strided_slice %3 {offsets = [0, 0], sizes = [8, 31], strides = [1, 1]} : vector<8x32xf32> to vector<8x31xf32>
    %30 = tpu.concatenate %28, %29 in 1 : vector<8x1xf32>, vector<8x31xf32> -> vector<8x32xf32>
    %cst_18 = arith.constant 1.000000e+00 : f32
    %31 = vector.broadcast %cst_18 : f32 to vector<8x32xf32>
    %32 = arith.subf %31, %27 : vector<8x32xf32>
    %33 = arith.addf %30, %32 : vector<8x32xf32>
    %cst_19 = arith.constant 2.000000e+00 : f32
    %34 = vector.broadcast %cst_19 : f32 to vector<8x32xf32>
    %35 = arith.mulf %34, %30 : vector<8x32xf32>
    %36 = arith.mulf %35, %32 : vector<8x32xf32>
    %37 = arith.subf %33, %36 : vector<8x32xf32>
    %c0_20 = arith.constant 0 : index
    %c0_21 = arith.constant 0 : index
    %38 = vector.load %arg7[%c0_20, %c0_21] : memref<8x32xf32, #tpu.memory_space<vmem>>, vector<8x32xf32>
    tpu.vector_store %arg7[%c0_20, %c0_21], %37 {strides = array<i32>} : memref<8x32xf32, #tpu.memory_space<vmem>>, vector<8x32xf32>,
    return
  }
  func.func @transform_0(%arg0: i32, %arg1: i32) -> (i32, i32) {
    %c0_i32 = arith.constant 0 : i32
    %c0_i32_0 = arith.constant 0 : i32
    return %arg0, %c0_i32 : i32, i32
  }
  func.func @transform_1(%arg0: i32, %arg1: i32) -> (i32, i32, i32) {
    %c0_i32 = arith.constant 0 : i32
    %c0_i32_0 = arith.constant 0 : i32
    %c0_i32_1 = arith.constant 0 : i32
    return %arg1, %c0_i32, %c0_i32_0 : i32, i32, i32
  }
  func.func @transform_2(%arg0: i32, %arg1: i32) -> (i32, i32, i32) {
    %c0_i32 = arith.constant 0 : i32
    %c0_i32_0 = arith.constant 0 : i32
    %c0_i32_1 = arith.constant 0 : i32
    return %arg1, %c0_i32, %c0_i32_0 : i32, i32, i32
  }
  func.func @transform_3(%arg0: i32, %arg1: i32) -> (i32, i32, i32) {
    %c0_i32 = arith.constant 0 : i32
    %c0_i32_0 = arith.constant 0 : i32
    %c0_i32_1 = arith.constant 0 : i32
    return %arg1, %c0_i32, %c0_i32_0 : i32, i32, i32
  }
  func.func @transform_4(%arg0: i32, %arg1: i32) -> (i32, i32, i32) {
    %c0_i32 = arith.constant 0 : i32
    %c0_i32_0 = arith.constant 0 : i32
    %c0_i32_1 = arith.constant 0 : i32
    return %arg1, %c0_i32, %c0_i32_0 : i32, i32, i32
  }
  func.func @transform_5(%arg0: i32, %arg1: i32) -> (i32, i32) {
    %c0_i32 = arith.constant 0 : i32
    %c0_i32_0 = arith.constant 0 : i32
    return %arg0, %c0_i32 : i32, i32
  }
}

</mosaic_0001>

<bundles_post_ra>
// kernel: ontological_transformer_forward.5
= control target key start
LH: loop header
LB: loop body
LE: loop exit
PB: predicated region body
PF: predicated region fallthrough
CT: control target
= control target key end

     0   :  { %8 = vsyncpa [#allocation3], 0  ;;  %s246_s0 = inlined_call_operand.vmem [shape: f32[2,32], index: 0, kind: input, shape index: {}]   ;;  %s247_s1 = inlined_call_operand.hbm [shape: bf16[32,32], index: 1, kind: input, shape index: {}]   ;;  %s248_s2 = inlined_call_operand.vmem [shape: f32[1,32], index: 2, kind: input, shape index: {}]   ;;  %s249_s3 = inlined_call_operand.hbm [shape: f32[2,32], index: 3, kind: output, shape index: {}]  }
   0x1   :  { %9 = vsyncpa [#allocation4], 0  ;;  %s190_s12 = smov [#allocation2]   ;;  %s142_s16 = scalar_lea.hbm %s247_s1, 256 }
   0x2   :  { %s17_s13 = sshll.u32 %s190_s12, 4  ;;  %p143_p0 = scmp.ne.s32.totalorder %s247_s1, %s142_s16  ;;  %s18_s13 = int_to_ptr.vmem [resolvable:$true] %s17_s13 }
   0x3   :  { %p146_p1 = scmp.lt.u32.totalorder %s142_s16, %s247_s1 }
   0x5   :  { %p148_p2 = pnand %p146_p1, %p143_p0 }
   0x7   :  { %151 = shalt.err (!%p148_p2)
}
   0x8   :  { %s152_s21 = scalar_lea.vmem %s18_s13, 256  ;;  %p157_p4 = scmp.lt.s32.totalorder %s18_s13, %s18_s13 }
   0x9   :  { %p153_p3 = scmp.ne.s32.totalorder %s18_s13, %s152_s21  ;;  %p158_p5 = scmp.lt.s32.totalorder %s152_s21, %s152_s21 }
   0xb   :  { %p159_p6 = por %p158_p5, %p157_p4 }
   0xd   :  { %p160_p7 = pnand %p159_p6, %p153_p3 }
   0xf   :  { %163 = shalt.err (!%p160_p7)
}
  0x10   :  { %s191_s22 = smov 64   ;;  %s192_s23 = smov 4  }
  0x11   :  { %23 = dma.hbm_to_vmem [thread:$0]  %s247_s1, 256, %s18_s13, [#allocation3], %s191_s22, %s191_s22, %s192_s23  }
  0x12   :  { %186 = dma.done.wait [#allocation3], 256  }
  0x13   :  { %187 = vsyncadd [#allocation3], 4294967040  ;;  %v193_v0 = vmov 0.0   ;;  %vm194_vm0 = vmmov 0   ;;  %v138_v1 = vld [vmem:[#allocation2] sm:$0xff]   ;;  %v139_v2 = vld [vmem:[#allocation2 + $0x8] sm:$0xff]  }
  0x14   :  { %124 = vmatprep.subr.bf16.mxu0 %v193_v0  ;;  %128 = vmatprep.mubr.msk.bf16.mxu0 %vm194_vm0, %v193_v0  ;;  %v30_v3 = vld [vmem:[%s246_s0] sm:$0x3]  ;;  %vm55_vm1 = vcmask 261120   ;;  %s195_s29 = smov [#allocation5]   ;;  %vm100_vm2 = vcmask 254976  }
  0x15   :  { %125 = vmatpush3.bf16.msra.mxu0 %v138_v1  ;;  %v31_v4 = vpack.c.bf16 %v30_v3, %v30_v3  ;;  %v117_v5 = vld [vmem:[%s248_s2] ss:$0 sm:$0xff]  ;;  %s108_s30 = sshll.u32 %s195_s29, 4  ;;  %s109_s30 = int_to_ptr.vmem [resolvable:$true] %s108_s30 }
  0x16   :  { %126 = vmatprep.subr.bf16.mxu0 %v193_v0  ;;  %s164_s0 = scalar_lea.vmem %s109_s30, 32  ;;  %p169_p9 = scmp.lt.s32.totalorder %s109_s30, %s109_s30 }
  0x17   :  { %p165_p8 = scmp.ne.s32.totalorder %s109_s30, %s164_s0  ;;  %p170_p10 = scmp.lt.s32.totalorder %s164_s0, %s164_s0 }
  0x19   :  { %127 = vmatpush3.bf16.msra.mxu0 %v139_v2  ;;  %p171_p11 = por %p170_p10, %p169_p9 }
  0x1b   :  { %p172_p12 = pnand %p171_p11, %p165_p8 }
  0x1c   :  { %129 = vmatmul.mubr.msk.bf16.vlgmr.msra.gmra.mrb[0].mxu0 %vm55_vm1, %v31_v4 }
  0xef   :  { %v93_v6 = vpop.f32.mrb[0].mxu0 }
  0xf0   :  { %v94_v7 = vadd.f32 %v117_v5, %v93_v6  ;;  %v130_v8 = vpop.f32.mrb[1].mxu0 }
  0xf1   :  { %v96_v9 = vpop.f32.mrb[2].mxu0 }
  0xf2   :  { %140 = vtanh.f32 %v94_v7  ;;  %v131_v10 = vpop.f32.mrb[3].mxu0 }
  0xfc   :  { %v141_v11 = vpop.eup %140 }
  0xfd   :  { %101 = vst.msk [vmem:[#allocation5] sm:$0x3] %vm100_vm2, %v141_v11 }
  0xfe   :  { %175 = shalt.err (!%p172_p12)
}
  0xff   :  { %s176_s5 = scalar_lea.hbm %s249_s3, 32 }
 0x100   :  { %p177_p13 = scmp.ne.s32.totalorder %s249_s3, %s176_s5  ;;  %p180_p0 = scmp.lt.u32.totalorder %s176_s5, %s249_s3 }
 0x102   :  { %p182_p1 = pnand %p180_p0, %p177_p13 }
 0x104   :  { %185 = shalt.err (!%p182_p1)
}
 0x105   :  { %111 = dma.vmem_to_hbm [thread:$0]  %s109_s30, 32, %s249_s3, [#allocation4]  }
 0x106   :  { %188 = dma.done.wait [#allocation4], 32  }
 0x107   :  { %189 = vsyncadd [#allocation4], 4294967264 }
 0x108   :  { %115 = vsyncpa [#allocation3], 1 }
 0x109   :  { %116 = vsyncpa [#allocation4], 1 }

// kernel: ontological_transformer_forward.3
= control target key start
LH: loop header
LB: loop body
LE: loop exit
PB: predicated region body
PF: predicated region fallthrough
CT: control target
= control target key end

     0   :  { %s1676_s0 = inlined_call_operand.hbm [shape: f32[16,32], index: 0, kind: input, shape index: {}]   ;;  %s1677_s1 = inlined_call_operand.hbm [shape: bf16[2,32,32], index: 1, kind: input, shape index: {}]   ;;  %s1678_s2 = inlined_call_operand.hbm [shape: f32[2,1,32], index: 2, kind: input, shape index: {}, may-alias: {2,4}]   ;;  %s1679_s3 = inlined_call_operand.hbm [shape: bf16[2,32,32], index: 3, kind: input, shape index: {}]   ;;  %s1680_s4 = inlined_call_operand.hbm [shape: f32[2,1,32], index: 4, kind: input, shape index: {}, may-alias: {2,4}]   ;;  %s1681_s5 = inlined_call_operand.hbm [shape: f32[16,32], index: 5, kind: output, shape index: {}]  }
   0x1   :  { %1701 = sst [smem:[#allocation26_spill]] %s1676_s0 }
   0x2   :  { %1702 = sst [smem:[#allocation27_spill]] %s1677_s1 }
   0x3   :  { %1703 = sst [smem:[#allocation28_spill]] %s1679_s3 }
   0x4   :  { %1704 = sst [smem:[#allocation29_spill]] %s1681_s5 }
   0x5   :  { %10 = vsyncpa [#allocation3], 0 }
   0x6   :  { %12 = vsyncpa [#allocation3 + $0x1], 0 }
   0x7   :  { %13 = vsyncpa [#allocation6], 0 }
   0x8   :  { %15 = vsyncpa [#allocation6 + $0x1], 0 }
   0x9   :  { %16 = vsyncpa [#allocation9], 0 }
   0xa   :  { %18 = vsyncpa [#allocation9 + $0x1], 0 }
   0xb   :  { %19 = vsyncpa [#allocation4], 0 }
   0xc   :  { %21 = vsyncpa [#allocation4 + $0x1], 0  ;;  %s1247_s18 = smov 0   ;;  %s1249_s19 = smov 0  }
   0xd   :  { %s1251_s20 = smov 0   ;;  %s1253_s21 = smov 0  }
   0xe   :  { %s1255_s22 = smov 0   ;;  %s1257_s23 = smov 0  }
   0xf   :  { %s1259_s24 = smov 0   ;;  %s1261_s25 = smov 0  }
  0x10   :  { %s1263_s26 = smov 0   ;;  %s1265_s27 = smov 0  }
  0x11   :  { %s1267_s28 = smov 0  }
  0x12 LB: > { %1705 = sst [smem:[#allocation16_spill]] %s1167_s19  ;;  %p1685_p0 = scmp.eq.s32.totalorder %s1203_s28, 0  ;;  %s1203_s28 = sphi %s1267_s28, %s27_s28   ;;  %s1199_s27 = sphi %s1265_s27, %s1760_s27   ;;  %s1195_s26 = sphi %s1263_s26, %s1759_s26   ;;  %s1191_s25 = sphi %s1261_s25, %s1751_s25   ;;  %s1187_s24 = sphi %s1259_s24, %s1758_s24   ;;  %s1183_s23 = sphi %s1257_s23, %s1750_s23   ;;  %s1179_s22 = sphi %s1255_s22, %s1757_s22   ;;  %s1175_s21 = sphi %s1253_s21, %s1756_s21   ;;  %s1171_s20 = sphi %s1251_s20, %s1755_s20   ;;  %s1167_s19 = sphi %s1249_s19, %s1754_s19   ;;  %s1163_s18 = sphi %s1247_s18, %s1747_s18  }
  0x13   : > { %1706 = sst [smem:[#allocation17_spill]] %s1183_s23  ;;  %p79_p1 = scmp.ne.s32.totalorder %s1171_s20, %s1167_s19 }
  0x14   : > { %1707 = sst [smem:[#allocation18_spill]] %s1187_s24  ;;  %p1684_p2 = scmp.lt.s32.totalorder %s1203_s28, 4 }
  0x15   : > { %1708 = sst [smem:[#allocation19_spill]] %s1191_s25  ;;  %s1683_s30 = sand.u32 1, %s1203_s28  }
  0x16   : > { %1709 = sst [smem:[#allocation20_spill]] %s1199_s27  ;;  %p81_p3 = por %p79_p1, %p1685_p0 }
  0x17   : > { %s1311_s6 = sand.u32 1, %s1171_s20   ;;  %s765_s7 = sshll.u32 %s1195_s26, 8 }
  0x18   : > { %s1682_s8 = sshll.u32 %s1311_s6, 4  ;;  %s1710_s1 = sld [smem:[#allocation27_spill]] }
  0x19   : > { %p1324_p4 = pnand %p1684_p2, %p81_p3  ;;  %s235_s13 = scalar_lea.vmem [#allocation5], %s1682_s8 }
  0x1a   : > { %s242_s14 = sshll.u32 %s235_s13, 4  ;;  %s1335_s15 = scalar_lea.sflag [#allocation6], %s1683_s30  ;;  %s1330_s14 = int_to_ptr.vmem [resolvable:$true] %s242_s14 }
  0x1b   : > { %s1711_s12 = scalar_select %p1324_p4, 1, 0 }
  0x1c   : > { %p1341_p7 = pneg %p1324_p4 }
  0x1e   : > { %s1320_s11 = scalar_lea.hbm %s1710_s1, %s765_s7  ;;  %s928_s13 = scalar_lea.hbm %s1710_s1, 512 }
  0x1f   : > { %s923_s16 = scalar_lea.hbm %s1320_s11, 256  ;;  %p929_p10 = scmp.lt.u32.totalorder %s1320_s11, %s1710_s1 }
  0x20   : > { %p924_p6 = scmp.ne.s32.totalorder %s1320_s11, %s923_s16  ;;  %p930_p11 = scmp.lt.u32.totalorder %s928_s13, %s923_s16 }
  0x21   : > { %p932_p13 = scmp.lt.u32.totalorder %s923_s16, %s1320_s11 }
  0x22   : > { %p926_p8 = pnand %p1341_p7, %p924_p6  ;;  %p931_p12 = por %p930_p11, %p929_p10 }
  0x24   : > { %p927_p9 = pneg %p926_p8  ;;  %p933_p1 = por %p932_p13, %p931_p12 }
  0x26   : > { %p934_p3 = pnand %p933_p1, %p927_p9 }
  0x28   : > { %937 = shalt.err (!%p934_p3)
}
  0x29   : > { %s938_s30 = scalar_lea.vmem %s1330_s14, 256  ;;  %s1205_s9 = smov [#allocation5]  }
  0x2a   : > { %p939_p6 = scmp.ne.s32.totalorder %s1330_s14, %s938_s30  ;;  %s943_s10 = sshll.u32 %s1205_s9, 4  ;;  %s944_s10 = int_to_ptr.vmem [resolvable:$false] %s943_s10 }
  0x2b   : > { %s945_s29 = scalar_lea.vmem %s944_s10, 512  ;;  %p946_p0 = scmp.lt.s32.totalorder %s1330_s14, %s944_s10 }
  0x2c   : > { %p941_p8 = pnand %p939_p6, %p1341_p7  ;;  %p947_p5 = scmp.lt.s32.totalorder %s945_s29, %s938_s30 }
  0x2e   : > { %p942_p2 = pneg %p941_p8  ;;  %p948_p10 = por %p947_p5, %p946_p0 }
  0x30   : > { %p949_p11 = pnand %p948_p10, %p942_p2 }
  0x32   : > { %952 = shalt.err (!%p949_p11)
}
  0x33   : > { %s1687_s8 = smov 64   ;;  %s1688_s16 = smov 4  }
  0x34   : > { %807 = dma.hbm_to_vmem [thread:$0]  (!%p1324_p4), %s1320_s11, 256, %s1330_s14, %s1335_s15, %s1687_s8, %s1687_s8, %s1688_s16  }
  0x35   : > { %p305_p0 = scmp.lt.s32.totalorder %s1203_s28, 5  ;;  %s1713_s3 = sld [smem:[#allocation28_spill]] }
  0x36   : > { %p1714_p2 = scmp.ge.s32.totalorder %s1203_s28, 1  ;;  %s1716_s29 = sshll.u32 %s1311_s6, 4 }
  0x37   : > { %s273_s1 = scalar_lea.vmem [#allocation8], %s1716_s29  ;;  %s1717_s11 = sand.u32 1, %s1203_s28  }
  0x38   : > { %p1378_p5 = pnand %p1714_p2, %p305_p0  ;;  %s280_s5 = sshll.u32 %s273_s1, 4  ;;  %s1384_s5 = int_to_ptr.vmem [resolvable:$true] %s280_s5 }
  0x39   : > { %s1388_s14 = scalar_lea.sflag [#allocation9], %s1717_s11 }
  0x3a   : > { %s1715_s10 = scalar_select %p1378_p5, 1, 0 }
  0x3b   : > { %s1374_s9 = scalar_lea.hbm %s1713_s3, %s765_s7  ;;  %s958_s8 = scalar_lea.hbm %s1713_s3, 512 }
  0x3c   : > { %s953_s30 = scalar_lea.hbm %s1374_s9, 256  ;;  %p959_p1 = scmp.lt.u32.totalorder %s1374_s9, %s1713_s3 }
  0x3d   : > { %p954_p9 = scmp.ne.s32.totalorder %s1374_s9, %s953_s30  ;;  %p960_p3 = scmp.lt.u32.totalorder %s958_s8, %s953_s30 }
  0x3e   : > { %p962_p8 = scmp.lt.u32.totalorder %s953_s30, %s1374_s9 }
  0x3f   : > { %p956_p12 = pnand %p954_p9, %p1341_p7  ;;  %p961_p6 = por %p960_p3, %p959_p1 }
  0x41   : > { %p957_p13 = pneg %p956_p12  ;;  %p963_p10 = por %p962_p8, %p961_p6 }
  0x43   : > { %p964_p11 = pnand %p963_p10, %p957_p13 }
  0x45   : > { %967 = shalt.err (!%p964_p11)
}
  0x46   : > { %s968_s1 = scalar_lea.vmem %s1384_s5, 256  ;;  %s1208_s29 = smov [#allocation8]  }
  0x47   : > { %p969_p0 = scmp.ne.s32.totalorder %s1384_s5, %s968_s1  ;;  %s973_s11 = sshll.u32 %s1208_s29, 4  ;;  %s974_s11 = int_to_ptr.vmem [resolvable:$false] %s973_s11 }
  0x48   : > { %s975_s25 = scalar_lea.vmem %s974_s11, 512  ;;  %p976_p12 = scmp.lt.s32.totalorder %s1384_s5, %s974_s11 }
  0x49   : > { %p971_p2 = pnand %p969_p0, %p1341_p7  ;;  %p977_p5 = scmp.lt.s32.totalorder %s975_s25, %s968_s1 }
  0x4b   : > { %p972_p9 = pneg %p971_p2  ;;  %p978_p1 = por %p977_p5, %p976_p12 }
  0x4d   : > { %p979_p3 = pnand %p978_p1, %p972_p9 }
  0x4f   : > { %982 = shalt.err (!%p979_p3)
}
  0x50   : > { %s1718_s8 = smov 4   ;;  %s1719_s16 = smov 64  }
  0x51   : > { %813 = dma.hbm_to_vmem [thread:$0]  (!%p1324_p4), %s1374_s9, 256, %s1384_s5, %s1388_s14, %s1719_s16, %s1719_s16, %s1718_s8  }
  0x52   : > { %s1416_s30 = sadd.s32 4294967295, %s1203_s28   ;;  %s734_s7 = sadd.s32 4294967294, %s1203_s28  }
  0x53   : > { %s36_s13 = sadd.s32 1, %s1195_s26  ;;  %s39_s1 = sadd.s32 1, %s1199_s27 }
  0x54   : > { %p37_p5 = scmp.ge.s32.totalorder %s36_s13, 2  ;;  %s46_s29 = sadd.s32 1, %s1183_s23 }
  0x55   : > { %p53_p13 = scmp.ne.s32.totalorder %s1183_s23, %s1179_s22  ;;  %p1721_p6 = scmp.eq.s32.totalorder %s1203_s28, 0 }
  0x56   : > { %s1762_s13 = smov (%p37_p5, %s36_s13), 0  ;;  %s1764_s1 = smov (!%p37_p5, %s39_s1), %s1199_s27 }
  0x57   : > { %1720 = sst [smem:[#allocation21_spill]] %s1762_s13  ;;  %p1432_p8 = por %p1721_p6, %p53_p13 }
  0x58   : > { %p59_p10 = scmp.ne.s32.totalorder %s1179_s22, %s1175_s21  ;;  %p41_p11 = scmp.ge.s32.totalorder %s1764_s1, 2 }
  0x59   : > { %p60_p0 = scmp.eq.s32.totalorder %s1416_s30, 0  ;;  %s69_s9 = ssub.s32 %s1195_s26, %s1762_s13 }
  0x5a   : > { %p85_p2 = scmp.ne.s32.totalorder %s1167_s19, %s1163_s18  ;;  %s1766_s1 = smov (%p41_p11, %s1764_s1), 0 }
  0x5b   : > { %1723 = sst [smem:[#allocation22_spill]] %s1766_s1  ;;  %p1448_p9 = por %p60_p0, %p59_p10 }
  0x5c   : > { %p70_p12 = scmp.eq.s32.totalorder %s69_s9, 0  ;;  %s43_s25 = ssub.s32 %s1199_s27, %s1766_s1 }
  0x5d   : > { %s1724_s11 = scalar_select %p1448_p9, 1, 0 }
  0x5e   : > { %p1454_p1 = por %p85_p2, %p60_p0  ;;  %p44_p3 = scmp.eq.s32.totalorder %s43_s25, 0 }
  0x5f   : > { %p187_p5 = scmp.eq.s32.totalorder %s1416_s30, 3  ;;  %s1727_s16 = sadd.s32 1, %s1171_s20 }
  0x60   : > { %s1725_s8 = scalar_select %p1454_p1, 1, 0 }
  0x61   : > { %s1462_s18 = scalar_select %p70_p12, %s1171_s20, %s1727_s16  }
  0x62   : > { %1726 = sst [smem:[#allocation23_spill]] %s1725_s8  ;;  %p1470_p6 = por %p187_p5, %p53_p13 }
  0x63   : > { %1728 = sst [smem:[#allocation24_spill]] %s1462_s18  ;;  %p193_p11 = scmp.eq.s32.totalorder %s734_s7, 3 }
  0x64   : > { %s1465_s3 = scalar_select %p44_p3, %s1183_s23, %s46_s29  }
  0x65   : > { %s1730_s13 = scalar_select %p1470_p6, 1, 0 }
  0x66   : > { %1729 = sst [smem:[#allocation25_spill]] %s1465_s3  ;;  %s213_s24 = sand.u32 1, %s1183_s23  }
  0x67   : > { %s738_s9 = sshll.u32 %s1199_s27, 7  ;;  %p1479_p0 = por %p193_p11, %p59_p10 }
  0x68   : > { %s737_s25 = sshll.u32 %s213_s24, 3  ;;  %s1732_s0 = sld [smem:[#allocation26_spill]] }
  0x69   : > { %s1731_s1 = scalar_select %p1479_p0, 1, 0 }
  0x6a   : > { %p1733_p2 = scmp.lt.s32.totalorder %s1203_s28, 4  ;;  %s217_s29 = scalar_lea.vmem [#allocation2], %s737_s25 }
  0x6b   : > { %s224_s27 = sshll.u32 %s217_s29, 4  ;;  %s214_s3 = scalar_lea.sflag [#allocation3], %s213_s24  ;;  %s1496_s27 = int_to_ptr.vmem [resolvable:$true] %s224_s27 }
  0x6c   : > { %p1492_p13 = pnand %p1733_p2, %p1432_p8 }
  0x6e   : > { %s1486_s16 = scalar_lea.hbm %s1732_s0, %s738_s9  ;;  %p985_p12 = pneg %p1492_p13 }
  0x6f   : > { %s983_s19 = scalar_lea.hbm %s1486_s16, 128  ;;  %s988_s9 = scalar_lea.hbm %s1732_s0, 256 }
  0x70   : > { %p984_p10 = scmp.ne.s32.totalorder %s1486_s16, %s983_s19  ;;  %p989_p8 = scmp.lt.u32.totalorder %s1486_s16, %s1732_s0 }
  0x71   : > { %p990_p11 = scmp.lt.u32.totalorder %s988_s9, %s983_s19  ;;  %p992_p0 = scmp.lt.u32.totalorder %s983_s19, %s1486_s16 }
  0x72   : > { %p986_p3 = pnand %p985_p12, %p984_p10 }
  0x73   : > { %p991_p2 = por %p990_p11, %p989_p8 }
  0x74   : > { %p987_p5 = pneg %p986_p3 }
  0x75   : > { %p993_p6 = por %p992_p0, %p991_p2 }
  0x77   : > { %p994_p1 = pnand %p993_p6, %p987_p5 }
  0x79   : > { %997 = shalt.err (!%p994_p1)
}
  0x7a   : > { %s998_s24 = scalar_lea.vmem %s1496_s27, 128  ;;  %s1209_s25 = smov [#allocation2]  }
  0x7b   : > { %p999_p10 = scmp.ne.s32.totalorder %s1496_s27, %s998_s24  ;;  %s1003_s29 = sshll.u32 %s1209_s25, 4  ;;  %s1004_s29 = int_to_ptr.vmem [resolvable:$false] %s1003_s29 }
  0x7c   : > { %s1005_s23 = scalar_lea.vmem %s1004_s29, 256  ;;  %p1006_p4 = scmp.lt.s32.totalorder %s1496_s27, %s1004_s29 }
  0x7d   : > { %p1001_p3 = pnand %p999_p10, %p985_p12  ;;  %p1007_p8 = scmp.lt.s32.totalorder %s1005_s23, %s998_s24 }
  0x7f   : > { %p1002_p9 = pneg %p1001_p3  ;;  %p1008_p11 = por %p1007_p8, %p1006_p4 }
  0x81   : > { %p1009_p0 = pnand %p1008_p11, %p1002_p9 }
  0x83   : > { %1012 = shalt.err (!%p1009_p0)
}
  0x84   : > { %804 = dma.hbm_to_vmem [thread:$0]  (!%p1492_p13), %s1486_s16, 128, %s1496_s27, %s214_s3  }
  0x85   : > { %s742_s18 = sshll.u32 %s1195_s26, 4  ;;  %s255_s19 = scalar_lea.vmem [#allocation7], %s1311_s6 }
  0x86   : > { %s262_s5 = sshll.u32 %s255_s19, 4  ;;  %s260_s24 = scalar_lea.hbm %s1678_s2, %s742_s18  ;;  %s263_s5 = int_to_ptr.vmem [resolvable:$true] %s262_s5 }
  0x87   : > { %s1013_s25 = scalar_lea.hbm %s260_s24, 16  ;;  %s1018_s23 = scalar_lea.hbm %s1678_s2, 32 }
  0x88   : > { %p1014_p4 = scmp.ne.s32.totalorder %s260_s24, %s1013_s25  ;;  %p1019_p6 = scmp.lt.u32.totalorder %s260_s24, %s1678_s2 }
  0x89   : > { %p1020_p13 = scmp.lt.u32.totalorder %s1018_s23, %s1013_s25  ;;  %p1022_p5 = scmp.lt.u32.totalorder %s1013_s25, %s260_s24 }
  0x8a   : > { %p1016_p9 = pnand %p1014_p4, %p1341_p7 }
  0x8b   : > { %p1021_p12 = por %p1020_p13, %p1019_p6 }
  0x8c   : > { %p1017_p1 = pneg %p1016_p9 }
  0x8d   : > { %p1023_p2 = por %p1022_p5, %p1021_p12 }
  0x8f   : > { %p1024_p10 = pnand %p1023_p2, %p1017_p1 }
  0x91   : > { %1027 = shalt.err (!%p1024_p10)
}
  0x92   : > { %s1028_s27 = scalar_lea.vmem %s263_s5, 16  ;;  %s1210_s16 = smov [#allocation7]  }
  0x93   : > { %p1029_p3 = scmp.ne.s32.totalorder %s263_s5, %s1028_s27  ;;  %s1033_s19 = sshll.u32 %s1210_s16, 4  ;;  %s1034_s19 = int_to_ptr.vmem [resolvable:$false] %s1033_s19 }
  0x94   : > { %s1035_s8 = scalar_lea.vmem %s1034_s19, 32  ;;  %p1036_p0 = scmp.lt.s32.totalorder %s263_s5, %s1034_s19 }
  0x95   : > { %p1031_p8 = pnand %p1029_p3, %p1341_p7  ;;  %p1037_p4 = scmp.lt.s32.totalorder %s1035_s8, %s1028_s27 }
  0x97   : > { %p1032_p11 = pneg %p1031_p8  ;;  %p1038_p9 = por %p1037_p4, %p1036_p0 }
  0x99   : > { %p1039_p6 = pnand %p1038_p9, %p1032_p11 }
  0x9b   : > { %1042 = shalt.err (!%p1039_p6)
}
  0x9c   : > { %p1735_p13 = scmp.ne.s32.totalorder %s1711_s12, 0  ;;  %s1548_s25 = scalar_lea.hbm %s1680_s4, %s742_s18 }
  0x9d   : > { %s293_s7 = scalar_lea.vmem [#allocation10], %s1311_s6  ;;  %s1043_s23 = scalar_lea.hbm %s1548_s25, 16 }
  0x9e   : > { %810 = dma.hbm_to_vmem [thread:$0]  (!%p1735_p13), %s260_s24, 16, %s263_s5, %s1335_s15  }
  0x9f   : > { %s300_s29 = sshll.u32 %s293_s7, 4  ;;  %p1044_p1 = scmp.ne.s32.totalorder %s1548_s25, %s1043_s23  ;;  %s301_s29 = int_to_ptr.vmem [resolvable:$true] %s300_s29 }
  0xa0   : > { %s1048_s5 = scalar_lea.hbm %s1680_s4, 32  ;;  %p1049_p2 = scmp.lt.u32.totalorder %s1548_s25, %s1680_s4 }
  0xa1   : > { %p1046_p12 = pnand %p1044_p1, %p1341_p7  ;;  %p1050_p10 = scmp.lt.u32.totalorder %s1048_s5, %s1043_s23 }
  0xa2   : > { %p1052_p8 = scmp.lt.u32.totalorder %s1043_s23, %s1548_s25 }
  0xa3   : > { %p1047_p5 = pneg %p1046_p12  ;;  %p1051_p3 = por %p1050_p10, %p1049_p2 }
  0xa5   : > { %p1053_p11 = por %p1052_p8, %p1051_p3 }
  0xa7   : > { %p1054_p0 = pnand %p1053_p11, %p1047_p5 }
  0xa9   : > { %1057 = shalt.err (!%p1054_p0)
}
  0xaa   : > { %s1058_s6 = scalar_lea.vmem %s301_s29, 16  ;;  %s1211_s18 = smov [#allocation10]  }
  0xab   : > { %p1059_p4 = scmp.ne.s32.totalorder %s301_s29, %s1058_s6  ;;  %s1063_s16 = sshll.u32 %s1211_s18, 4  ;;  %s1064_s16 = int_to_ptr.vmem [resolvable:$false] %s1063_s16 }
  0xac   : > { %s1065_s19 = scalar_lea.vmem %s1064_s16, 32  ;;  %p1066_p1 = scmp.lt.s32.totalorder %s301_s29, %s1064_s16 }
  0xad   : > { %p1061_p9 = pnand %p1059_p4, %p1341_p7  ;;  %p1067_p12 = scmp.lt.s32.totalorder %s1065_s19, %s1058_s6 }
  0xaf   : > { %p1062_p6 = pneg %p1061_p9  ;;  %p1068_p13 = por %p1067_p12, %p1066_p1 }
  0xb1   : > { %p1069_p2 = pnand %p1068_p13, %p1062_p6 }
  0xb3   : > { %1072 = shalt.err (!%p1069_p2)
}
  0xb4   : > { %p1736_p10 = scmp.ne.s32.totalorder %s1711_s12, 0  ;;  %p1737_p5 = scmp.ne.s32.totalorder %s1715_s10, 0 }
  0xb5   : > { %s1572_s17 = sand.u32 (!%p1737_p5), 1, %s1179_s22   ;;  %p1738_p7 = scmp.ne.s32.totalorder (!%p1737_p5), %s1724_s11, 0 }
  0xb6   : > { %816 = dma.hbm_to_vmem [thread:$0]  (!%p1736_p10), %s1548_s25, 16, %s301_s29, %s1388_s14  }
  0xb7   : > { %309 = sbr.rel (%p1737_p5) target bundleno = 696 (0x2b8), region = 40  ;;  %s748_s8 = sshll.u32 (!%p1737_p5), %s1572_s17, 3 }
  0xb8   : > { %s312_s0 = scalar_lea.sflag (!%p1737_p5), [#allocation3], %s1572_s17  ;;  %s315_s9 = scalar_lea.vmem (!%p1737_p5), [#allocation2], %s748_s8 }
  0xbe   : > { %1146 = dma.done.wait (%p1738_p7), %s312_s0, 128  }
  0xbf   : > { %1148 = vsyncadd (%p1738_p7), %s312_s0, 4294967168  ;;  %s1739_s12 = sld [smem:[#allocation16_spill]]  ;;  %s1740_s14 = sld [smem:[#allocation23_spill]] }
  0xc0   : > { %s320_s25 = sand.u32 1, %s1416_s30  }
  0xc1   : > { %s321_s29 = scalar_lea.sflag [#allocation6], %s320_s25 }
  0xc5   : > { %s1582_s10 = sand.u32 1, %s1739_s12   ;;  %p1741_p13 = scmp.ne.s32.totalorder %s1740_s14, 0 }
  0xc6   : > { %s749_s7 = sshll.u32 %s1582_s10, 4 }
  0xc7   : > { %s324_s23 = scalar_lea.vmem [#allocation5], %s749_s7 }
  0xc8   : > { %1150 = dma.done.wait (%p1741_p13), %s321_s29, 272  }
  0xc9   : > { %1152 = vsyncadd (%p1741_p13), %s321_s29, 4294967024  ;;  %s332_s3 = scalar_lea.vmem [#allocation7], %s1582_s10  ;;  %s338_s11 = scalar_lea.sflag [#allocation9], %s320_s25 }
  0xca   : > { %s341_s15 = scalar_lea.vmem [#allocation8], %s749_s7 }
  0xcb   : > { %1154 = dma.done.wait (%p1741_p13), %s338_s11, 272  }
  0xcc   : > { %1156 = vsyncadd (%p1741_p13), %s338_s11, 4294967024  ;;  %s349_s30 = scalar_lea.vmem [#allocation10], %s1582_s10  ;;  %s1595_s5 = scalar_lea.vmem [#allocation11], %s748_s8 }
  0xcd   : > { %s1742_s24 = sld [smem:[#allocation18_spill]] }
  0xd3   : > { %p752_p3 = scmp.ne.s32.totalorder %s1742_s24, 0 }
  0xd4   : > { %v399_v0 = vld [vmem:[%s315_s9] sm:$0xff] (!%p752_p3)  ;;  %vm400_vm0 = vcmask (!%p752_p3), 261120  }
  0xd5   : > { %398 = sbr.rel (%p752_p3) target bundleno = 220 (0xdc), region = 64  ;;  %401 = vst.msk [vmem:[%s1595_s5] sm:$0xff] (!%p752_p3), %vm400_vm0, %v399_v0 }
  0xdc PF: > { %v917_v1 = vld [vmem:[%s324_s23] sm:$0xff]   ;;  %v1212_v2 = vmov 0.0   ;;  %v918_v3 = vld [vmem:[%s324_s23 + $0x8] sm:$0xff]   ;;  %vm1213_vm1 = vmmov 0   ;;  %vm432_vm2 = vcmask 261120   ;;  %s1214_s27 = smov 97  }
  0xdd   : > { %773 = vmatprep.subr.bf16.mxu0 %v1212_v2  ;;  %781 = vmatprep.subr.bf16.mxu1 %v1212_v2  ;;  %v402_v4 = vld [vmem:[%s1595_s5] sm:$0xff]  ;;  %s1215_s6 = smov 1   ;;  %s1743_s18 = sld [smem:[#allocation19_spill]]  ;;  %vm550_vm3 = vcmask 7168  }
  0xde   : > { %774 = vmatpush3.bf16.msra.mxu0 %v917_v1  ;;  %777 = vmatprep.mubr.msk.bf16.mxu0 %vm1213_vm1, %v1212_v2  ;;  %v413_v5 = vpack.c.bf16 %v402_v4, %v402_v4  ;;  %v919_v6 = vld [vmem:[%s341_s15] sm:$0xff]   ;;  %v920_v7 = vld [vmem:[%s341_s15 + $0x8] sm:$0xff]   ;;  %s572_s19 = sshll.u32 %s1595_s5, 4  ;;  %s1744_s9 = sld [smem:[#allocation29_spill]]  ;;  %s1613_s19 = int_to_ptr.vmem [resolvable:$true] %s572_s19 }
  0xdf   : > { %775 = vmatprep.subr.bf16.mxu0 %v1212_v2  ;;  %785 = vmatprep.mubr.msk.bf16.mxu1 %vm1213_vm1, %v1212_v2  ;;  %v753_v8 = vld [vmem:[%s332_s3] ss:$0 sm:$0xff]  ;;  %s559_s14 = scalar_lea.sflag [#allocation4], %s1572_s17  ;;  %s1073_s25 = scalar_lea.vmem %s1613_s19, 128 }
  0xe0   : > { %782 = vmatpush3.bf16.msra.mxu1 %v919_v6  ;;  %544 = vrot.lane.b32.xlu0 %v402_v4, %s1214_s27  ;;  %v757_v22 = vld [vmem:[%s349_s30] ss:$0 sm:$0xff]  ;;  %p1074_p8 = scmp.ne.s32.totalorder %s1613_s19, %s1073_s25  ;;  %p1745_p11 = scmp.ne.s32.totalorder %s1730_s13, 0 }
  0xe1   : > { %783 = vmatprep.subr.bf16.mxu1 %v1212_v2  ;;  %s1216_s10 = smov [#allocation11]  }
  0xe2   : > { %776 = vmatpush3.bf16.msra.mxu0 %v918_v3  ;;  %p1075_p0 = pnand %p1074_p8, %p1745_p11  ;;  %s1077_s7 = sshll.u32 %s1216_s10, 4  ;;  %s1078_s7 = int_to_ptr.vmem [resolvable:$false] %s1077_s7 }
  0xe3   : > { %s762_s16 = sshll.u32 %s1743_s18, 7  ;;  %s1079_s29 = scalar_lea.vmem %s1078_s7, 256 }
  0xe4   : > { %784 = vmatpush3.bf16.msra.mxu1 %v920_v7  ;;  %547 = vrot.lane.b32.xlu0 %v402_v4, %s1215_s6  ;;  %s1611_s12 = scalar_lea.hbm %s1744_s9, %s762_s16  ;;  %p1076_p4 = pneg %p1075_p0 }
  0xe5   : > { %778 = vmatmul.mubr.msk.bf16.vlgmr.msra.gmra.mrb[0].mxu0 %vm432_vm2, %v413_v5  ;;  %p1080_p9 = scmp.lt.s32.totalorder %s1613_s19, %s1078_s7  ;;  %p1081_p6 = scmp.lt.s32.totalorder %s1079_s29, %s1073_s25 }
  0xe7   : > { %p1082_p1 = por %p1081_p6, %p1080_p9 }
  0xe9   : > { %p1083_p12 = pnand %p1082_p1, %p1076_p4 }
 0x152   : > { %v545_v20 = vpop.permute.xlu0 %544 }
 0x156   : > { %v548_v21 = vpop.permute.xlu0 %547 }
 0x157   : > { %v551_v23 = vsel %vm550_vm3, %v545_v20, %v548_v21 }
 0x158   : > { %v554_v28 = vmul.f32 2.0, %v551_v23 }
 0x1b8   : > { %v470_v9 = vpop.f32.mrb[0].mxu0 }
 0x1b9   : > { %v471_v10 = vadd.f32 %v753_v8, %v470_v9  ;;  %v779_v11 = vpop.f32.mrb[1].mxu0 }
 0x1ba   : > { %v473_v12 = vpop.f32.mrb[2].mxu0 }
 0x1bb   : > { %v477_v13 = vmul.f32 0.70710677, %v471_v10  ;;  %v780_v14 = vpop.f32.mrb[3].mxu0  ;;  %v476_v16 = vmul.f32 0.5, %v471_v10 }
 0x1bd   : > { %921 = verf.f32 %v477_v13 }
 0x1c7   : > { %v922_v15 = vpop.eup %921 }
 0x1c8   : > { %v479_v17 = vadd.f32 1.0, %v922_v15 }
 0x1ca   : > { %v480_v18 = vmul.f32 %v479_v17, %v476_v16 }
 0x1cc   : > { %v481_v19 = vpack.c.bf16 %v480_v18, %v480_v18 }
 0x1ce   : > { %786 = vmatmul.mubr.msk.bf16.vlgmr.msra.gmra.mrb[0].mxu1 %vm432_vm2, %v481_v19 }
 0x2a1   : > { %v537_v24 = vpop.f32.mrb[0].mxu1 }
 0x2a2   : > { %v538_v25 = vadd.f32 %v757_v22, %v537_v24  ;;  %v787_v26 = vpop.f32.mrb[1].mxu1 }
 0x2a3   : > { %v540_v27 = vpop.f32.mrb[2].mxu1 }
 0x2a4   : > { %v552_v29 = vsub.f32 1.0, %v538_v25  ;;  %v788_v30 = vpop.f32.mrb[3].mxu1 }
 0x2a6   : > { %v553_v31 = vadd.f32 %v552_v29, %v551_v23  ;;  %v555_v32 = vmul.f32 %v554_v28, %v552_v29 }
 0x2a8   : > { %v556_v33 = vsub.f32 %v553_v31, %v555_v32 }
 0x2aa   : > { %557 = vst.msk [vmem:[%s1595_s5] sm:$0xff] %vm432_vm2, %v556_v33 }
 0x2ab   : > { %1086 = shalt.err (!%p1083_p12)
}
 0x2ac   : > { %s1087_s17 = scalar_lea.hbm %s1611_s12, 128  ;;  %s1091_s11 = scalar_lea.hbm %s1744_s9, 256 }
 0x2ad   : > { %p1088_p2 = scmp.ne.s32.totalorder %s1611_s12, %s1087_s17  ;;  %p1092_p7 = scmp.lt.u32.totalorder %s1611_s12, %s1744_s9 }
 0x2ae   : > { %p1093_p13 = scmp.lt.u32.totalorder %s1091_s11, %s1087_s17  ;;  %p1095_p8 = scmp.lt.u32.totalorder %s1087_s17, %s1611_s12 }
 0x2af   : > { %p1089_p10 = pnand %p1088_p2, %p1745_p11 }
 0x2b0   : > { %p1094_p3 = por %p1093_p13, %p1092_p7 }
 0x2b1   : > { %p1090_p5 = pneg %p1089_p10 }
 0x2b2   : > { %p1096_p0 = por %p1095_p8, %p1094_p3 }
 0x2b4   : > { %p1097_p4 = pnand %p1096_p0, %p1090_p5 }
 0x2b6   : > { %1100 = shalt.err (!%p1097_p4)
}
 0x2b7   : > { %799 = dma.vmem_to_hbm [thread:$0]  (%p1745_p11), %s1613_s19, 128, %s1611_s12, %s559_s14  }
 0x2b8 PF: > { %p822_p9 = scmp.ge.s32.totalorder %s1203_s28, 2  ;;  %s584_s5 = sand.u32 1, %s1175_s21  }
 0x2b9   : > { %p1746_p6 = scmp.ne.s32.totalorder %s1731_s1, 0  ;;  %s585_s24 = scalar_lea.sflag [#allocation4], %s584_s5 }
 0x2bb   : > { %p818_p1 = pnand %p822_p9, %p1746_p6 }
 0x2bd   : > { %1158 = dma.done.wait (!%p818_p1), %s585_s24, 128  }
 0x2be   : > { %1160 = vsyncadd (!%p818_p1), %s585_s24, 4294967168  ;;  %s27_s28 = sadd.s32 1, %s1203_s28   ;;  %s1747_s18 = sld [smem:[#allocation16_spill]] }
 0x2bf   : > { %p24_p12 = scmp.ge.s32.totalorder %s27_s28, 6   ;;  %s1748_s13 = sld [smem:[#allocation24_spill]] }
 0x2c0   : > { %s1749_s27 = sld [smem:[#allocation17_spill]]  ;;  %s1750_s23 = sld [smem:[#allocation25_spill]] }
 0x2c1   : > { %s1751_s25 = sld [smem:[#allocation20_spill]]  ;;  %s1752_s6 = sld [smem:[#allocation21_spill]] }
 0x2c2   : > { %s1753_s16 = sld [smem:[#allocation22_spill]]  ;;  %s1754_s19 = smov %s1171_s20 }
 0x2c3   : > { %s1756_s21 = smov %s1179_s22  ;;  %s1758_s24 = smov %s1195_s26 }
 0x2c4   :  { %26 = sbr.rel (!%p24_p12) target bundleno = 18 (0x12), region = 137 }
 0x2c5   : > { %s1755_s20 = smov %s1748_s13 }
 0x2c6   : > { %s1757_s22 = smov %s1749_s27 }
 0x2c7   : > { %s1759_s26 = smov %s1752_s6 }
 0x2c8   : > { %s1760_s27 = smov %s1753_s16 }
 0x2cb   :  { %590 = vsyncpa [#allocation3], 1 }
 0x2cc   :  { %592 = vsyncpa [#allocation3 + $0x1], 1 }
 0x2cd   :  { %593 = vsyncpa [#allocation6], 1 }
 0x2ce   :  { %595 = vsyncpa [#allocation6 + $0x1], 1 }
 0x2cf   :  { %596 = vsyncpa [#allocation9], 1 }
 0x2d0   :  { %598 = vsyncpa [#allocation9 + $0x1], 1 }
 0x2d1   :  { %599 = vsyncpa [#allocation4], 1 }
 0x2d2   :  { %601 = vsyncpa [#allocation4 + $0x1], 1 }

// kernel: ontological_transformer_forward.4
= control target key start
LH: loop header
LB: loop body
LE: loop exit
PB: predicated region body
PF: predicated region fallthrough
CT: control target
= control target key end

     0   :  { %8 = vsyncpa [#allocation3], 0  ;;  %s1003_s0 = inlined_call_operand.hbm [shape: f32[16,32], index: 0, kind: input, shape index: {}]   ;;  %s1004_s1 = inlined_call_operand.hbm [shape: bf16[32,128], index: 1, kind: input, shape index: {}]   ;;  %s1005_s2 = inlined_call_operand.hbm [shape: f32[1,128], index: 2, kind: input, shape index: {}]   ;;  %s1006_s3 = inlined_call_operand.hbm [shape: f32[16,128], index: 3, kind: output, shape index: {}]  }
   0x1   :  { %10 = vsyncpa [#allocation3 + $0x1], 0 }
   0x2   :  { %11 = vsyncpa [#allocation6], 0 }
   0x3   :  { %12 = vsyncpa [#allocation4], 0 }
   0x4   :  { %14 = vsyncpa [#allocation4 + $0x1], 0  ;;  %s752_s12 = smov 0   ;;  %s754_s13 = smov 0  }
   0x5   :  { %s756_s14 = smov 0   ;;  %s758_s15 = smov 0  }
   0x6   :  { %s760_s16 = smov 0   ;;  %s762_s17 = smov 0  }
   0x7 LB: > { %s429_s18 = sadd.s32 4294967295, %s722_s17   ;;  %s430_s19 = sadd.s32 4294967294, %s722_s17   ;;  %s722_s17 = sphi %s762_s17, %s20_s17   ;;  %s718_s16 = sphi %s760_s16, %s1028_s16   ;;  %s714_s15 = sphi %s758_s15, %s1027_s15   ;;  %s710_s14 = sphi %s756_s14, %s1026_s14   ;;  %s706_s13 = sphi %s754_s13, %s1025_s13   ;;  %s702_s12 = sphi %s752_s12, %s1024_s12  }
   0x8   : > { %p52_p0 = scmp.ne.s32.totalorder %s706_s13, %s702_s12  ;;  %p786_p1 = scmp.eq.s32.totalorder %s429_s18, 0 }
   0x9   : > { %p790_p2 = scmp.eq.s32.totalorder %s429_s18, 1  ;;  %p136_p3 = scmp.eq.s32.totalorder %s430_s19, 1 }
   0xa   : > { %s1011_s20 = scalar_select %p786_p1, 1, 0 }
   0xb   : > { %p796_p4 = por %p786_p1, %p52_p0  ;;  %p431_p5 = scmp.ge.s32.totalorder %s722_s17, 1 }
   0xc   : > { %p801_p6 = por %p136_p3, %p52_p0  ;;  %p143_p7 = scmp.lt.s32.totalorder %s722_s17, 3 }
   0xd   : > { %s1013_s22 = scalar_select %p796_p4, 1, 0 }
   0xe   : > { %s1014_s23 = scalar_select %p801_p6, 1, 0 }
   0xf   : > { %p806_p8 = pnand %p431_p5, %p143_p7  ;;  %s724_s25 = smov [#allocation5]  }
  0x10   : > { %s157_s26 = sshll.u32 %s724_s25, 4  ;;  %s725_s28 = smov [#allocation7]   ;;  %s810_s26 = int_to_ptr.vmem [resolvable:$true] %s157_s26 }
  0x11   : > { %p473_p9 = pneg %p806_p8  ;;  %s173_s29 = sshll.u32 %s725_s28, 4  ;;  %s821_s29 = int_to_ptr.vmem [resolvable:$true] %s173_s29 }
  0x12   : > { %s550_s5 = scalar_lea.hbm %s1004_s1, 256 }
  0x13   : > { %p817_p11 = pnand %p473_p9, %p786_p1  ;;  %p551_p12 = scmp.ne.s32.totalorder %s1004_s1, %s550_s5 }
  0x14   : > { %p557_p5 = scmp.lt.u32.totalorder %s550_s5, %s1004_s1 }
  0x15   : > { %p552_p13 = pneg %p817_p11 }
  0x17   : > { %p553_p0 = pnand %p552_p13, %p551_p12 }
  0x19   : > { %p554_p3 = pneg %p553_p0 }
  0x1b   : > { %p559_p7 = pnand %p557_p5, %p554_p3 }
  0x1d   : > { %562 = shalt.err (!%p559_p7)
}
  0x1e   : > { %s563_s10 = scalar_lea.vmem %s810_s26, 256  ;;  %p571_p1 = scmp.lt.s32.totalorder %s810_s26, %s810_s26 }
  0x1f   : > { %p564_p9 = scmp.ne.s32.totalorder %s810_s26, %s563_s10  ;;  %p572_p12 = scmp.lt.s32.totalorder %s563_s10, %s563_s10 }
  0x21   : > { %p566_p10 = pnand %p564_p9, %p552_p13  ;;  %p573_p0 = por %p572_p12, %p571_p1 }
  0x23   : > { %p567_p6 = pneg %p566_p10 }
  0x25   : > { %p574_p4 = pnand %p573_p0, %p567_p6 }
  0x27   : > { %577 = shalt.err (!%p574_p4)
}
  0x28   : > { %s726_s11 = smov 64   ;;  %s727_s18 = smov 4  }
  0x29   : > { %476 = dma.hbm_to_vmem [thread:$0]  (!%p817_p11), %s1004_s1, 256, %s810_s26, [#allocation6], %s726_s11, %s726_s11, %s727_s18  }
  0x2a   : > { %s578_s4 = scalar_lea.hbm %s1005_s2, 16 }
  0x2b   : > { %p579_p1 = scmp.ne.s32.totalorder %s1005_s2, %s578_s4  ;;  %p585_p10 = scmp.lt.u32.totalorder %s578_s4, %s1005_s2 }
  0x2d   : > { %p581_p4 = pnand %p579_p1, %p552_p13 }
  0x2f   : > { %p582_p6 = pneg %p581_p4 }
  0x31   : > { %p587_p3 = pnand %p585_p10, %p582_p6 }
  0x33   : > { %590 = shalt.err (!%p587_p3)
}
  0x34   : > { %s591_s26 = scalar_lea.vmem %s821_s29, 16  ;;  %s598_s9 = scalar_lea.vmem %s821_s29, 32 }
  0x35   : > { %p592_p5 = scmp.ne.s32.totalorder %s821_s29, %s591_s26  ;;  %p599_p12 = scmp.lt.s32.totalorder %s821_s29, %s821_s29 }
  0x36   : > { %p600_p0 = scmp.lt.s32.totalorder %s598_s9, %s591_s26 }
  0x37   : > { %p594_p7 = pnand %p592_p5, %p552_p13 }
  0x38   : > { %p601_p1 = por %p600_p0, %p599_p12 }
  0x39   : > { %p595_p9 = pneg %p594_p7 }
  0x3b   : > { %p602_p4 = pnand %p601_p1, %p595_p9 }
  0x3d   : > { %605 = shalt.err (!%p602_p4)
}
  0x3e   : > { %479 = dma.hbm_to_vmem [thread:$0]  (!%p817_p11), %s1005_s2, 16, %s821_s29, [#allocation6]  }
  0x3f   : > { %s32_s18 = sadd.s32 1, %s718_s16  ;;  %s39_s19 = sadd.s32 1, %s710_s14 }
  0x40   : > { %p34_p13 = scmp.ge.s32.totalorder %s32_s18, 2  ;;  %p46_p6 = scmp.ne.s32.totalorder %s710_s14, %s706_s13 }
  0x41   : > { %p47_p10 = scmp.eq.s32.totalorder %s722_s17, 0  ;;  %p490_p3 = scmp.lt.s32.totalorder %s722_s17, 2 }
  0x42   : > { %s1030_s18 = smov (%p34_p13, %s32_s18), 0  ;;  %p886_p7 = por %p790_p2, %p46_p6 }
  0x43   : > { %p48_p5 = por %p47_p10, %p46_p6  ;;  %s36_s25 = ssub.s32 %s718_s16, %s1030_s18 }
  0x44   : > { %s1017_s27 = scalar_select %p886_p7, 1, 0 }
  0x45   : > { %s184_s28 = sand.u32 1, %s710_s14   ;;  %p37_p9 = scmp.eq.s32.totalorder %s36_s25, 0 }
  0x46   : > { %s435_s29 = sshll.u32 %s184_s28, 3  ;;  %s436_s30 = sshll.u32 %s718_s16, 7 }
  0x47   : > { %s895_s4 = scalar_select %p37_p9, %s710_s14, %s39_s19  }
  0x48   : > { %s900_s7 = scalar_lea.hbm %s1003_s0, %s436_s30  ;;  %s188_s21 = scalar_lea.vmem [#allocation2], %s435_s29 }
  0x49   : > { %s195_s8 = sshll.u32 %s188_s21, 4  ;;  %p904_p2 = pnand %p490_p3, %p48_p5  ;;  %s908_s8 = int_to_ptr.vmem [resolvable:$true] %s195_s8 }
  0x4a   : > { %s185_s9 = scalar_lea.sflag [#allocation3], %s184_s28  ;;  %s606_s10 = scalar_lea.hbm %s900_s7, 128 }
  0x4b   : > { %p607_p11 = scmp.ne.s32.totalorder %s900_s7, %s606_s10  ;;  %p608_p12 = pneg %p904_p2 }
  0x4c   : > { %s611_s25 = scalar_lea.hbm %s1003_s0, 256  ;;  %p612_p4 = scmp.lt.u32.totalorder %s900_s7, %s1003_s0 }
  0x4d   : > { %p609_p0 = pnand %p608_p12, %p607_p11  ;;  %p613_p13 = scmp.lt.u32.totalorder %s611_s25, %s606_s10 }
  0x4e   : > { %p615_p10 = scmp.lt.u32.totalorder %s606_s10, %s900_s7 }
  0x4f   : > { %p610_p1 = pneg %p609_p0  ;;  %p614_p6 = por %p613_p13, %p612_p4 }
  0x51   : > { %p616_p3 = por %p615_p10, %p614_p6 }
  0x53   : > { %p617_p5 = pnand %p616_p3, %p610_p1 }
  0x55   : > { %620 = shalt.err (!%p617_p5)
}
  0x56   : > { %s621_s28 = scalar_lea.vmem %s908_s8, 128  ;;  %s728_s5 = smov [#allocation2]  }
  0x57   : > { %p622_p9 = scmp.ne.s32.totalorder %s908_s8, %s621_s28  ;;  %s626_s6 = sshll.u32 %s728_s5, 4  ;;  %s627_s6 = int_to_ptr.vmem [resolvable:$false] %s626_s6 }
  0x58   : > { %s628_s21 = scalar_lea.vmem %s627_s6, 256  ;;  %p629_p7 = scmp.lt.s32.totalorder %s908_s8, %s627_s6 }
  0x59   : > { %p624_p11 = pnand %p622_p9, %p608_p12  ;;  %p630_p4 = scmp.lt.s32.totalorder %s628_s21, %s621_s28 }
  0x5b   : > { %p625_p0 = pneg %p624_p11  ;;  %p631_p13 = por %p630_p4, %p629_p7 }
  0x5d   : > { %p632_p6 = pnand %p631_p13, %p625_p0 }
  0x5f   : > { %635 = shalt.err (!%p632_p6)
}
  0x60   : > { %483 = dma.hbm_to_vmem [thread:$0]  (!%p904_p2), %s900_s7, 128, %s908_s8, %s185_s9  }
  0x61   : > { %204 = sbr.rel (%p806_p8) target bundleno = 345 (0x159), region = 32  ;;  %s938_s10 = sand.u32 (!%p806_p8), 1, %s706_s13  }
  0x62   : > { %s438_s11 = sshll.u32 (!%p806_p8), %s938_s10, 3  ;;  %s207_s19 = scalar_lea.sflag (!%p806_p8), [#allocation3], %s938_s10 }
  0x63   : > { %s210_s25 = scalar_lea.vmem (!%p806_p8), [#allocation2], %s438_s11  ;;  %p1019_p7 = scmp.ne.s32.totalorder (!%p806_p8), %s1013_s22, 0 }
  0x68   : > { %689 = dma.done.wait (%p1019_p7), %s207_s19, 128  }
  0x69   : > { %691 = vsyncadd (%p1019_p7), %s207_s19, 4294967168  ;;  %p1020_p12 = scmp.ne.s32.totalorder %s1011_s20, 0 }
  0x6b   : > { %693 = dma.done.wait (%p1020_p12), [#allocation6], 272  }
  0x6c   : > { %695 = vsyncadd (%p1020_p12), [#allocation6], 4294967024  ;;  %v729_v0 = vmov 0.0   ;;  %vm730_vm0 = vmmov 0   ;;  %v548_v1 = vld [vmem:[#allocation5] sm:$0xff]   ;;  %v549_v2 = vld [vmem:[#allocation5 + $0x8] sm:$0xff]  }
  0x6d   : > { %453 = vmatprep.subr.bf16.mxu0 %v729_v0  ;;  %457 = vmatprep.mubr.msk.bf16.mxu0 %vm730_vm0, %v729_v0  ;;  %v242_v3 = vld [vmem:[%s210_s25] sm:$0xff]  ;;  %vm267_vm1 = vcmask 261120   ;;  %s447_s22 = sshll.u32 %s714_s15, 7  ;;  %s240_s20 = scalar_lea.vmem [#allocation8], %s438_s11 }
  0x6e   : > { %454 = vmatpush3.bf16.msra.mxu0 %v548_v1  ;;  %v243_v4 = vpack.c.bf16 %v242_v3, %v242_v3  ;;  %v442_v5 = vld [vmem:[#allocation7] ss:$0 sm:$0xff]  ;;  %s327_s24 = sshll.u32 %s240_s20, 4  ;;  %s954_s26 = scalar_lea.hbm %s1006_s3, %s447_s22  ;;  %s956_s24 = int_to_ptr.vmem [resolvable:$true] %s327_s24 }
  0x6f   : > { %455 = vmatprep.subr.bf16.mxu0 %v729_v0  ;;  %s313_s9 = scalar_lea.sflag [#allocation4], %s938_s10  ;;  %s636_s15 = scalar_lea.vmem %s956_s24, 128 }
  0x70   : > { %p637_p8 = scmp.ne.s32.totalorder %s956_s24, %s636_s15  ;;  %p1021_p2 = scmp.ne.s32.totalorder %s1017_s27, 0 }
  0x71   : > { %s731_s29 = smov [#allocation8]  }
  0x72   : > { %456 = vmatpush3.bf16.msra.mxu0 %v549_v2  ;;  %p638_p1 = pnand %p637_p8, %p1021_p2  ;;  %s640_s30 = sshll.u32 %s731_s29, 4  ;;  %s641_s30 = int_to_ptr.vmem [resolvable:$false] %s640_s30 }
  0x73   : > { %s642_s28 = scalar_lea.vmem %s641_s30, 256  ;;  %p643_p3 = scmp.lt.s32.totalorder %s956_s24, %s641_s30 }
  0x74   : > { %p639_p10 = pneg %p638_p1  ;;  %p644_p5 = scmp.lt.s32.totalorder %s642_s28, %s636_s15 }
  0x75   : > { %458 = vmatmul.mubr.msk.bf16.vlgmr.msra.gmra.mrb[0].mxu0 %vm267_vm1, %v243_v4 }
  0x76   : > { %p645_p9 = por %p644_p5, %p643_p3 }
  0x78   : > { %p646_p11 = pnand %p645_p9, %p639_p10 }
 0x148   : > { %v305_v6 = vpop.f32.mrb[0].mxu0 }
 0x149   : > { %v306_v7 = vadd.f32 %v442_v5, %v305_v6  ;;  %v459_v8 = vpop.f32.mrb[1].mxu0 }
 0x14a   : > { %v308_v9 = vpop.f32.mrb[2].mxu0 }
 0x14b   : > { %311 = vst [vmem:[%s240_s20] sm:$0xff] %v306_v7  ;;  %v460_v10 = vpop.f32.mrb[3].mxu0 }
 0x14c   : > { %649 = shalt.err (!%p646_p11)
}
 0x14d   : > { %s650_s5 = scalar_lea.hbm %s954_s26, 128  ;;  %s654_s10 = scalar_lea.hbm %s1006_s3, 256 }
 0x14e   : > { %p651_p0 = scmp.ne.s32.totalorder %s954_s26, %s650_s5  ;;  %p655_p6 = scmp.lt.u32.totalorder %s954_s26, %s1006_s3 }
 0x14f   : > { %p656_p7 = scmp.lt.u32.totalorder %s654_s10, %s650_s5  ;;  %p658_p8 = scmp.lt.u32.totalorder %s650_s5, %s954_s26 }
 0x150   : > { %p652_p4 = pnand %p651_p0, %p1021_p2 }
 0x151   : > { %p657_p12 = por %p656_p7, %p655_p6 }
 0x152   : > { %p653_p13 = pneg %p652_p4 }
 0x153   : > { %p659_p1 = por %p658_p8, %p657_p12 }
 0x155   : > { %p660_p10 = pnand %p659_p1, %p653_p13 }
 0x157   : > { %663 = shalt.err (!%p660_p10)
}
 0x158   : > { %471 = dma.vmem_to_hbm [thread:$0]  (%p1021_p2), %s956_s24, 128, %s954_s26, %s313_s9  }
 0x159 PF: > { %s339_s25 = sand.u32 1, %s702_s12   ;;  %p1022_p3 = scmp.ne.s32.totalorder %s1014_s23, 0 }
 0x15a   : > { %p1023_p5 = scmp.ge.s32.totalorder %s722_s17, 2  ;;  %s340_s22 = scalar_lea.sflag [#allocation4], %s339_s25 }
 0x15c   : > { %p485_p9 = pnand %p1023_p5, %p1022_p3 }
 0x15e   : > { %697 = dma.done.wait (!%p485_p9), %s340_s22, 128  }
 0x15f   : > { %699 = vsyncadd (!%p485_p9), %s340_s22, 4294967168  ;;  %s20_s17 = sadd.s32 1, %s722_s17   ;;  %s1024_s12 = smov %s706_s13 }
 0x160   : > { %p17_p11 = scmp.ge.s32.totalorder %s20_s17, 4   ;;  %s1025_s13 = smov %s710_s14 }
 0x161   : > { %s1026_s14 = smov %s895_s4  ;;  %s1027_s15 = smov %s718_s16 }
 0x162   : > { %s1028_s16 = smov %s1030_s18  ;;  %19 = sbr.rel (!%p17_p11) target bundleno = 7 (0x7), region = 87 }
 0x169   :  { %345 = vsyncpa [#allocation3], 1 }
 0x16a   :  { %347 = vsyncpa [#allocation3 + $0x1], 1 }
 0x16b   :  { %348 = vsyncpa [#allocation6], 1 }
 0x16c   :  { %349 = vsyncpa [#allocation4], 1 }
 0x16d   :  { %351 = vsyncpa [#allocation4 + $0x1], 1 }

</bundles_post_ra>
